<compile_context>
chip_gen: v5e
topology: v5e:2x2
jax: 0.10.0
libtpu: 0.0.40
codegen_flags: <defaults>
</compile_context>

<pallas_src>
import jax
import jax.numpy as jnp
from jax.experimental import pallas as pl
from jax.experimental.pallas import tpu as pltpu


def _fused_mlp_kernel(x_ref, w1_ref, b1_ref, w2_ref, b2_ref, w3_ref, b3_ref,
                      o_ref):
    f32 = jnp.float32
    x = x_ref[...]

    # layer 1: Linear + ReLU   (dropout p=0.1 -> identity in eval mode)
    h = jnp.dot(x, w1_ref[...], preferred_element_type=f32)
    h = jnp.maximum(h + b1_ref[...].astype(f32), 0.0).astype(x.dtype)

    # layer 2: Linear + ReLU   (dropout p=0.1 -> identity in eval mode)
    h = jnp.dot(h, w2_ref[...], preferred_element_type=f32)
    h = jnp.maximum(h + b2_ref[...].astype(f32), 0.0).astype(x.dtype)

    # layer 3: Linear (regression head, lane-padded to 128 outputs)
    h = jnp.dot(h, w3_ref[...], preferred_element_type=f32)
    h = h + b3_ref[...].astype(f32)

    o_ref[...] = h.astype(o_ref.dtype)


def fused_mlp_pallas(x, w1, b1, w2, b2, w3, b3, *, tm=16):
    """Fused 3-layer MLP. x:(M,K); wN stored as (in,out); bN as (1,out)."""
    M, K = x.shape
    K1, H1 = w1.shape
    H1b, H2 = w2.shape
    H2b, NO = w3.shape
    assert K == K1 and H1 == H1b and H2 == H2b
    assert M % tm == 0, "pad the batch to a multiple of tm before calling"

    return pl.pallas_call(
        _fused_mlp_kernel,
        out_shape=jax.ShapeDtypeStruct((M, NO), x.dtype),
        grid_spec=pltpu.PrefetchScalarGridSpec(
            num_scalar_prefetch=0,
            grid=(M // tm,),
            in_specs=[
                pl.BlockSpec((tm, K), lambda i: (i, 0)),   # x row tile
                pl.BlockSpec((K, H1), lambda i: (0, 0)),   # w1 (VMEM-resident)
                pl.BlockSpec((1, H1), lambda i: (0, 0)),   # b1
                pl.BlockSpec((H1, H2), lambda i: (0, 0)),  # w2 (VMEM-resident)
                pl.BlockSpec((1, H2), lambda i: (0, 0)),   # b2
                pl.BlockSpec((H2, NO), lambda i: (0, 0)),  # w3 (VMEM-resident)
                pl.BlockSpec((1, NO), lambda i: (0, 0)),   # b3
            ],
            out_specs=pl.BlockSpec((tm, NO), lambda i: (i, 0)),
        ),
        compiler_params=pltpu.CompilerParams(
            dimension_semantics=("parallel",)
        ),
    )(x, w1, b1, w2, b2, w3, b3)


def init_linear_params(key, in_features, out_features, dtype=jnp.bfloat16):
    """Deterministic init, PyTorch-style uniform(-1/sqrt(in), 1/sqrt(in))."""
    kw, kb = jax.random.split(key)
    bound = 1.0 / jnp.sqrt(jnp.float32(in_features))
    # stored as W.T: (in_features, out_features)
    w_t = jax.random.uniform(
        kw, (in_features, out_features), jnp.float32, -bound, bound
    ).astype(dtype)
    b = jax.random.uniform(
        kb, (out_features,), jnp.float32, -bound, bound
    ).astype(dtype)
    return w_t, b


class ProteinRegressorPallas:
    """Small-scale analogue of the PyTorch ProteinRegressor (46848->16384->4096->1).

    At the full size the kernel would need K/N tiling with an f32 accumulator
    scratch and a raised vmem_limit_bytes (re-derived per generation:
    128 MiB VMEM on v5e/v6e vs 64 MiB on v7x). At this small test scale all
    weights and activations fit resident in VMEM in one fused kernel.
    """

    def __init__(self, key, hidden_size=512, h1=256, h2=128, dtype=jnp.bfloat16):
        k1, k2, k3 = jax.random.split(key, 3)
        self.w1, b1 = init_linear_params(k1, hidden_size, h1, dtype)
        self.w2, b2 = init_linear_params(k2, h1, h2, dtype)
        # final layer has 1 output; pad to 128 lanes with zeros for TPU tiling
        # (lane-dense output), slice back to 1 column after the kernel.
        w3, b3 = init_linear_params(k3, h2, 1, dtype)
        self.w3 = jnp.zeros((h2, 128), dtype).at[:, :1].set(w3)
        self.b1 = b1.reshape(1, h1)
        self.b2 = b2.reshape(1, h2)
        self.b3 = jnp.zeros((1, 128), dtype).at[0, :1].set(b3)
        self.tm = 16  # bf16 sublane-packed row tile

    def __call__(self, embed):
        batch = embed.shape[0]
        tm = self.tm
        pad_rows = (-batch) % tm
        if pad_rows:
            embed = jnp.pad(embed, ((0, pad_rows), (0, 0)))
        out = fused_mlp_pallas(embed, self.w1, self.b1, self.w2, self.b2,
                               self.w3, self.b3, tm=tm)
        return out[:batch, :1]  # (batch, 1)


if __name__ == "__main__":
    key = jax.random.PRNGKey(0)
    k_model, k_x = jax.random.split(key)

    batch, hidden_size, h1, h2 = 8, 512, 256, 128
    model = ProteinRegressorPallas(k_model, hidden_size, h1, h2)

    x = jax.random.normal(k_x, (batch, hidden_size), jnp.float32).astype(jnp.bfloat16)

    y = model(x)
    jax.block_until_ready(y)

    # sanity check vs plain-JAX reference (same bf16-between-layers semantics)
    def ref(x):
        f32 = jnp.float32
        o = jnp.maximum(x.astype(f32) @ model.w1.astype(f32) + model.b1.astype(f32), 0)
        o = o.astype(jnp.bfloat16)
        o = jnp.maximum(o.astype(f32) @ model.w2.astype(f32) + model.b2.astype(f32), 0)
        o = o.astype(jnp.bfloat16)
        o = o.astype(f32) @ model.w3.astype(f32) + model.b3.astype(f32)
        return o.astype(jnp.bfloat16)[:, :1]

    ref_y = ref(x)
    assert y.shape == (batch, 1)
    assert jnp.allclose(y.astype(jnp.float32), ref_y.astype(jnp.float32),
                        atol=1e-1, rtol=1e-1)

    print("KERNEL_OK")
</pallas_src>

<mosaic_0001>
module attributes {stable_mosaic.version = 11 : i64} {
  func.func @_fused_mlp_kernel(%arg0: i32, %arg1: memref<16x512xbf16, #tpu.memory_space<vmem>>, %arg2: memref<512x256xbf16, #tpu.memory_space<vmem>>, %arg3: memref<1x256xbf16, #tpu.memory_space<vmem>>, %arg4: memref<256x128xbf16, #tpu.memory_space<vmem>>, %arg5: memref<1x128xbf16, #tpu.memory_space<vmem>>, %arg6: memref<128x128xbf16, #tpu.memory_space<vmem>>, %arg7: memref<1x128xbf16, #tpu.memory_space<vmem>>, %arg8: memref<16x128xbf16, #tpu.memory_space<vmem>>) attributes {dimension_semantics = [#tpu.dimension_semantics<parallel>], iteration_bounds = array<i64: 1>, scalar_prefetch = 0 : i64, scratch_operands = 0 : i64, tpu.core_type = #tpu.core_type<tc>, window_params = [{transform_indices = @transform_0, window_bounds = array<i64: 16, 512>}, {pipeline_mode = #tpu.pipeline_mode<synchronous>, transform_indices = @transform_1, window_bounds = array<i64: 512, 256>}, {pipeline_mode = #tpu.pipeline_mode<synchronous>, transform_indices = @transform_2, window_bounds = array<i64: 1, 256>}, {pipeline_mode = #tpu.pipeline_mode<synchronous>, transform_indices = @transform_3, window_bounds = array<i64: 256, 128>}, {pipeline_mode = #tpu.pipeline_mode<synchronous>, transform_indices = @transform_4, window_bounds = array<i64: 1, 128>}, {pipeline_mode = #tpu.pipeline_mode<synchronous>, transform_indices = @transform_5, window_bounds = array<i64: 128, 128>}, {pipeline_mode = #tpu.pipeline_mode<synchronous>, transform_indices = @transform_6, window_bounds = array<i64: 1, 128>}, {transform_indices = @transform_7, window_bounds = array<i64: 16, 128>}]} {
    %c0 = arith.constant 0 : index
    %c0_0 = arith.constant 0 : index
    %0 = vector.load %arg1[%c0, %c0_0] : memref<16x512xbf16, #tpu.memory_space<vmem>>, vector<16x512xbf16>
    %c0_1 = arith.constant 0 : index
    %c0_2 = arith.constant 0 : index
    %1 = vector.load %arg2[%c0_1, %c0_2] : memref<512x256xbf16, #tpu.memory_space<vmem>>, vector<512x256xbf16>
    %cst = arith.constant dense<0.000000e+00> : vector<16x256xf32>
    %2 = tpu.matmul %0, %1, %cst {dimension_numbers = #tpu.dot_dimension_numbers<[1], [0], [0], [1], [0, 0, 1, 1], [], []>} : vector<16x512xbf16>, vector<512x256xbf16>, vector<16x256xf32> -> vector<16x256xf32>
    %c0_3 = arith.constant 0 : index
    %c0_4 = arith.constant 0 : index
    %3 = vector.load %arg3[%c0_3, %c0_4] : memref<1x256xbf16, #tpu.memory_space<vmem>>, vector<1x256xbf16>
    %4 = arith.extf %3 : vector<1x256xbf16> to vector<1x256xf32>
    %5 = vector.broadcast %4 : vector<1x256xf32> to vector<16x256xf32>
    %6 = arith.addf %2, %5 : vector<16x256xf32>
    %cst_5 = arith.constant 0.000000e+00 : f32
    %7 = vector.broadcast %cst_5 : f32 to vector<16x256xf32>
    %8 = arith.maximumf %6, %7 : vector<16x256xf32>
    %9 = arith.truncf %8 : vector<16x256xf32> to vector<16x256xbf16>
    %c0_6 = arith.constant 0 : index
    %c0_7 = arith.constant 0 : index
    %10 = vector.load %arg4[%c0_6, %c0_7] : memref<256x128xbf16, #tpu.memory_space<vmem>>, vector<256x128xbf16>
    %cst_8 = arith.constant dense<0.000000e+00> : vector<16x128xf32>
    %11 = tpu.matmul %9, %10, %cst_8 {dimension_numbers = #tpu.dot_dimension_numbers<[1], [0], [0], [1], [0, 0, 1, 1], [], []>} : vector<16x256xbf16>, vector<256x128xbf16>, vector<16x128xf32> -> vector<16x128xf32>
    %c0_9 = arith.constant 0 : index
    %c0_10 = arith.constant 0 : index
    %12 = vector.load %arg5[%c0_9, %c0_10] : memref<1x128xbf16, #tpu.memory_space<vmem>>, vector<1x128xbf16>
    %13 = arith.extf %12 : vector<1x128xbf16> to vector<1x128xf32>
    %14 = vector.broadcast %13 : vector<1x128xf32> to vector<16x128xf32>
    %15 = arith.addf %11, %14 : vector<16x128xf32>
    %cst_11 = arith.constant 0.000000e+00 : f32
    %16 = vector.broadcast %cst_11 : f32 to vector<16x128xf32>
    %17 = arith.maximumf %15, %16 : vector<16x128xf32>
    %18 = arith.truncf %17 : vector<16x128xf32> to vector<16x128xbf16>
    %c0_12 = arith.constant 0 : index
    %c0_13 = arith.constant 0 : index
    %19 = vector.load %arg6[%c0_12, %c0_13] : memref<128x128xbf16, #tpu.memory_space<vmem>>, vector<128x128xbf16>
    %cst_14 = arith.constant dense<0.000000e+00> : vector<16x128xf32>
    %20 = tpu.matmul %18, %19, %cst_14 {dimension_numbers = #tpu.dot_dimension_numbers<[1], [0], [0], [1], [0, 0, 1, 1], [], []>} : vector<16x128xbf16>, vector<128x128xbf16>, vector<16x128xf32> -> vector<16x128xf32>
    %c0_15 = arith.constant 0 : index
    %c0_16 = arith.constant 0 : index
    %21 = vector.load %arg7[%c0_15, %c0_16] : memref<1x128xbf16, #tpu.memory_space<vmem>>, vector<1x128xbf16>
    %22 = arith.extf %21 : vector<1x128xbf16> to vector<1x128xf32>
    %23 = vector.broadcast %22 : vector<1x128xf32> to vector<16x128xf32>
    %24 = arith.addf %20, %23 : vector<16x128xf32>
    %25 = arith.truncf %24 : vector<16x128xf32> to vector<16x128xbf16>
    %c0_17 = arith.constant 0 : index
    %c0_18 = arith.constant 0 : index
    %26 = vector.load %arg8[%c0_17, %c0_18] : memref<16x128xbf16, #tpu.memory_space<vmem>>, vector<16x128xbf16>
    tpu.vector_store %arg8[%c0_17, %c0_18], %25 {strides = array<i32>} : memref<16x128xbf16, #tpu.memory_space<vmem>>, vector<16x128xbf16>,
    return
  }
  func.func @transform_0(%arg0: i32) -> (i32, i32) {
    %c0_i32 = arith.constant 0 : i32
    %c0_i32_0 = arith.constant 0 : i32
    return %arg0, %c0_i32 : i32, i32
  }
  func.func @transform_1(%arg0: i32) -> (i32, i32) {
    %c0_i32 = arith.constant 0 : i32
    %c0_i32_0 = arith.constant 0 : i32
    %c0_i32_1 = arith.constant 0 : i32
    return %c0_i32, %c0_i32_0 : i32, i32
  }
  func.func @transform_2(%arg0: i32) -> (i32, i32) {
    %c0_i32 = arith.constant 0 : i32
    %c0_i32_0 = arith.constant 0 : i32
    %c0_i32_1 = arith.constant 0 : i32
    return %c0_i32, %c0_i32_0 : i32, i32
  }
  func.func @transform_3(%arg0: i32) -> (i32, i32) {
    %c0_i32 = arith.constant 0 : i32
    %c0_i32_0 = arith.constant 0 : i32
    %c0_i32_1 = arith.constant 0 : i32
    return %c0_i32, %c0_i32_0 : i32, i32
  }
  func.func @transform_4(%arg0: i32) -> (i32, i32) {
    %c0_i32 = arith.constant 0 : i32
    %c0_i32_0 = arith.constant 0 : i32
    %c0_i32_1 = arith.constant 0 : i32
    return %c0_i32, %c0_i32_0 : i32, i32
  }
  func.func @transform_5(%arg0: i32) -> (i32, i32) {
    %c0_i32 = arith.constant 0 : i32
    %c0_i32_0 = arith.constant 0 : i32
    %c0_i32_1 = arith.constant 0 : i32
    return %c0_i32, %c0_i32_0 : i32, i32
  }
  func.func @transform_6(%arg0: i32) -> (i32, i32) {
    %c0_i32 = arith.constant 0 : i32
    %c0_i32_0 = arith.constant 0 : i32
    %c0_i32_1 = arith.constant 0 : i32
    return %c0_i32, %c0_i32_0 : i32, i32
  }
  func.func @transform_7(%arg0: i32) -> (i32, i32) {
    %c0_i32 = arith.constant 0 : i32
    %c0_i32_0 = arith.constant 0 : i32
    return %arg0, %c0_i32 : i32, i32
  }
}

</mosaic_0001>

<bundles_post_ra>
// kernel: tpu_custom_call.1
= control target key start
LH: loop header
LB: loop body
LE: loop exit
PB: predicated region body
PF: predicated region fallthrough
CT: control target
= control target key end

     0   :  { %12 = vsyncpa [#allocation3], 0  ;;  %s1636_s0 = inlined_call_operand.hbm [shape: bf16[16,512], index: 0, kind: input, shape index: {}]   ;;  %s1637_s1 = inlined_call_operand.hbm [shape: bf16[512,256], index: 1, kind: input, shape index: {}]   ;;  %s1638_s2 = inlined_call_operand.hbm [shape: bf16[1,256], index: 2, kind: input, shape index: {}]   ;;  %s1639_s3 = inlined_call_operand.hbm [shape: bf16[256,128], index: 3, kind: input, shape index: {}]   ;;  %s1640_s4 = inlined_call_operand.vmem [shape: bf16[1,128], index: 4, kind: input, shape index: {}]   ;;  %s1641_s5 = inlined_call_operand.hbm [shape: bf16[128,128], index: 5, kind: input, shape index: {}]   ;;  %s1642_s6 = inlined_call_operand.vmem [shape: bf16[1,128], index: 6, kind: input, shape index: {}]   ;;  %s1643_s7 = inlined_call_operand.hbm [shape: bf16[16,128], index: 7, kind: output, shape index: {}]  }
   0x1   :  { %13 = vsyncpa [#allocation6], 0 }
   0x2   :  { %14 = vsyncpa [#allocation9], 0  ;;  %s33_s26 = sshll.u32 %s1637_s1, 4  ;;  %s34_s26 = int_to_ptr.hbm [resolvable:$true] %s33_s26 }
   0x3   :  { %15 = vsyncpa [#allocation4], 0  ;;  %s1535_s27 = smov [#allocation5]   ;;  %s57_s8 = sshll.u32 %s1639_s3, 4  ;;  %s58_s8 = int_to_ptr.hbm [resolvable:$true] %s57_s8 }
   0x4   :  { %s35_s28 = sshll.u32 %s1535_s27, 4  ;;  %s1536_s9 = smov 128   ;;  %s36_s28 = int_to_ptr.vmem [resolvable:$true] %s35_s28 }
   0x5   :  { %s1537_s10 = smov 8   ;;  %s1538_s11 = smov [#allocation8]  }
   0x6   :  { %41 = dma.hbm_to_vmem [thread:$0]  %s34_s26, 8192, %s36_s28, [#allocation6], %s1536_s9, %s1536_s9, %s1537_s10  }
   0x7   :  { %s59_s12 = sshll.u32 %s1538_s11, 4  ;;  %s1539_s13 = smov 64   ;;  %s60_s12 = int_to_ptr.vmem [resolvable:$true] %s59_s12 }
   0x8   :  { %s1540_s14 = smov 4   ;;  %s20_s16 = sshll.u32 %s1636_s0, 4  ;;  %s21_s16 = int_to_ptr.hbm [resolvable:$true] %s20_s16 }
   0x9   :  { %65 = dma.hbm_to_vmem [thread:$0]  %s58_s8, 2048, %s60_s12, [#allocation9], %s1539_s13, %s1539_s13, %s1540_s14  }
   0xa   :  { %s1541_s17 = smov [#allocation2]   ;;  %s47_s20 = sshll.u32 %s1638_s2, 4  ;;  %s48_s20 = int_to_ptr.hbm [resolvable:$true] %s47_s20 }
   0xb   :  { %s22_s3 = sshll.u32 %s1541_s17, 4  ;;  %s1542_s21 = smov 256   ;;  %s23_s3 = int_to_ptr.vmem [resolvable:$true] %s22_s3 }
   0xc   :  { %s1543_s22 = smov 16   ;;  %s1544_s23 = smov [#allocation7]  }
   0xd   :  { %28 = dma.hbm_to_vmem [thread:$0]  %s21_s16, 512, %s23_s3, [#allocation3], %s1542_s21, %s1542_s21, %s1543_s22  }
   0xe   :  { %s49_s24 = sshll.u32 %s1544_s23, 4  ;;  %s72_s27 = sshll.u32 %s1641_s5, 4  ;;  %s50_s24 = int_to_ptr.vmem [resolvable:$true] %s49_s24  ;;  %s73_s27 = int_to_ptr.hbm [resolvable:$true] %s72_s27 }
   0xf   :  { %52 = dma.hbm_to_vmem [thread:$0]  %s48_s20, 32, %s50_s24, [#allocation6]  }
  0x10   :  { %s1545_s0 = smov [#allocation10]  }
  0x11   :  { %s74_s28 = sshll.u32 %s1545_s0, 4  ;;  %s75_s28 = int_to_ptr.vmem [resolvable:$true] %s74_s28 }
  0x12   :  { %80 = dma.hbm_to_vmem [thread:$0]  %s73_s27, 1024, %s75_s28, [#allocation9], %s1539_s13, %s1539_s13, %s1540_s14  }
  0x13   :  { %1527 = dma.done.wait [#allocation3], 512  }
  0x14   :  { %1528 = vsyncadd [#allocation3], 4294966784 }
  0x15   :  { %1529 = dma.done.wait [#allocation6], 8224  }
  0x16   :  { %1530 = vsyncadd [#allocation6], 4294959072 }
  0x17   :  { %1531 = dma.done.wait [#allocation9], 3072  }
  0x18   :  { %1532 = vsyncadd [#allocation9], 4294964224  ;;  %v980_v0 = vld [vmem:[#allocation5 + $0x70] sm:$0xf]  ;;  %v1293_v1 = vld [vmem:[#allocation5 + $0x74] sm:$0xf0] }
  0x19   :  { %v1044_v2 = vld [vmem:[#allocation5 + $0xf0] sm:$0xf]  ;;  %v981_v3 = vor.u32 %v1293_v1, %v980_v0  ;;  %v1309_v4 = vld [vmem:[#allocation5 + $0xf4] sm:$0xf0]  ;;  %v972_v11 = vld [vmem:[#allocation5 + $0x60] sm:$0xf] }
  0x1a   :  { %v1108_v5 = vld [vmem:[#allocation5 + $0x170] sm:$0xf]  ;;  %v1325_v6 = vld [vmem:[#allocation5 + $0x174] sm:$0xf0]  ;;  %v1045_v7 = vor.u32 %v1309_v4, %v1044_v2  ;;  %v1291_v13 = vld [vmem:[#allocation5 + $0x64] sm:$0xf0] }
  0x1b   :  { %v1109_v8 = vor.u32 %v1325_v6, %v1108_v5  ;;  %v1172_v9 = vld [vmem:[#allocation5 + $0x1f0] sm:$0xf]  ;;  %v1341_v10 = vld [vmem:[#allocation5 + $0x1f4] sm:$0xf0]  ;;  %520 = vmatpush.bf16.msra.mxu0 %v981_v3  ;;  %v1036_v14 = vld [vmem:[#allocation5 + $0xe0] sm:$0xf]  ;;  %v973_v16 = vor.u32 %v1291_v13, %v972_v11 }
  0x1c   :  { %v1173_v12 = vor.u32 %v1341_v10, %v1172_v9  ;;  %v1307_v15 = vld [vmem:[#allocation5 + $0xe4] sm:$0xf0]  ;;  %534 = vmatpush.bf16.msra.mxu1 %v1045_v7  ;;  %v1100_v18 = vld [vmem:[#allocation5 + $0x160] sm:$0xf]  ;;  %v964_v23 = vld [vmem:[#allocation5 + $0x50] sm:$0xf] }
  0x1d   :  { %548 = vmatpush.bf16.msra.mxu2 %v1109_v8  ;;  %v1037_v17 = vor.u32 %v1307_v15, %v1036_v14  ;;  %v1323_v19 = vld [vmem:[#allocation5 + $0x164] sm:$0xf0]  ;;  %v1164_v20 = vld [vmem:[#allocation5 + $0x1e0] sm:$0xf]  ;;  %v1289_v24 = vld [vmem:[#allocation5 + $0x54] sm:$0xf0] }
  0x1e   :  { %562 = vmatpush.bf16.msra.mxu3 %v1173_v12  ;;  %v1101_v21 = vor.u32 %v1323_v19, %v1100_v18  ;;  %v1339_v22 = vld [vmem:[#allocation5 + $0x1e4] sm:$0xf0]  ;;  %v1028_v26 = vld [vmem:[#allocation5 + $0xd0] sm:$0xf]  ;;  %v1305_v27 = vld [vmem:[#allocation5 + $0xd4] sm:$0xf0]  ;;  %v965_v29 = vor.u32 %v1289_v24, %v964_v23 }
  0x1f   :  { %v1165_v25 = vor.u32 %v1339_v22, %v1164_v20  ;;  %v1092_v28 = vld [vmem:[#allocation5 + $0x150] sm:$0xf]  ;;  %521 = vmatpush.bf16.msra.mxu0 %v973_v16  ;;  %v1321_v30 = vld [vmem:[#allocation5 + $0x154] sm:$0xf0]  ;;  %v1029_v33 = vor.u32 %v1305_v27, %v1028_v26  ;;  %v956_v35 = vld [vmem:[#allocation5 + $0x40] sm:$0xf] }
  0x20   :  { %v1156_v31 = vld [vmem:[#allocation5 + $0x1d0] sm:$0xf]  ;;  %v1337_v32 = vld [vmem:[#allocation5 + $0x1d4] sm:$0xf0]  ;;  %535 = vmatpush.bf16.msra.mxu1 %v1037_v17  ;;  %v1093_v34 = vor.u32 %v1321_v30, %v1092_v28  ;;  %v1287_v36 = vld [vmem:[#allocation5 + $0x44] sm:$0xf0] }
  0x21   :  { %549 = vmatpush.bf16.msra.mxu2 %v1101_v21  ;;  %v1020_v37 = vld [vmem:[#allocation5 + $0xc0] sm:$0xf]  ;;  %v1157_v38 = vor.u32 %v1337_v32, %v1156_v31  ;;  %v1303_v39 = vld [vmem:[#allocation5 + $0xc4] sm:$0xf0]  ;;  %v957_v44 = vor.u32 %v1287_v36, %v956_v35  ;;  %v948_v47 = vld [vmem:[#allocation5 + $0x30] sm:$0xf] }
  0x22   :  { %563 = vmatpush.bf16.msra.mxu3 %v1165_v25  ;;  %v1084_v40 = vld [vmem:[#allocation5 + $0x140] sm:$0xf]  ;;  %v1319_v41 = vld [vmem:[#allocation5 + $0x144] sm:$0xf0]  ;;  %v1021_v45 = vor.u32 %v1303_v39, %v1020_v37  ;;  %v1285_v48 = vld [vmem:[#allocation5 + $0x34] sm:$0xf0] }
  0x23   :  { %v1148_v42 = vld [vmem:[#allocation5 + $0x1c0] sm:$0xf]  ;;  %v1335_v43 = vld [vmem:[#allocation5 + $0x1c4] sm:$0xf0]  ;;  %522 = vmatpush.bf16.msra.mxu0 %v965_v29  ;;  %v1085_v46 = vor.u32 %v1319_v41, %v1084_v40  ;;  %v1012_v49 = vld [vmem:[#allocation5 + $0xb0] sm:$0xf]  ;;  %v949_v56 = vor.u32 %v1285_v48, %v948_v47 }
  0x24   :  { %536 = vmatpush.bf16.msra.mxu1 %v1029_v33  ;;  %v1149_v50 = vor.u32 %v1335_v43, %v1148_v42  ;;  %v1301_v51 = vld [vmem:[#allocation5 + $0xb4] sm:$0xf0]  ;;  %v1076_v52 = vld [vmem:[#allocation5 + $0x130] sm:$0xf]  ;;  %v940_v59 = vld [vmem:[#allocation5 + $0x20] sm:$0xf] }
  0x25   :  { %550 = vmatpush.bf16.msra.mxu2 %v1093_v34  ;;  %v1317_v53 = vld [vmem:[#allocation5 + $0x134] sm:$0xf0]  ;;  %v1140_v54 = vld [vmem:[#allocation5 + $0x1b0] sm:$0xf]  ;;  %v1013_v57 = vor.u32 %v1301_v51, %v1012_v49  ;;  %v1283_v60 = vld [vmem:[#allocation5 + $0x24] sm:$0xf0] }
  0x26   :  { %564 = vmatpush.bf16.msra.mxu3 %v1157_v38  ;;  %v1333_v55 = vld [vmem:[#allocation5 + $0x1b4] sm:$0xf0]  ;;  %v1077_v58 = vor.u32 %v1317_v53, %v1076_v52  ;;  %v1004_v61 = vld [vmem:[#allocation5 + $0xa0] sm:$0xf]  ;;  %v1299_v63 = vld [vmem:[#allocation5 + $0xa4] sm:$0xf0]  ;;  %v941_v4 = vor.u32 %v1283_v60, %v940_v59 }
  0x27   :  { %523 = vmatpush.bf16.msra.mxu0 %v957_v44  ;;  %v1141_v62 = vor.u32 %v1333_v55, %v1140_v54  ;;  %v1068_v0 = vld [vmem:[#allocation5 + $0x120] sm:$0xf]  ;;  %v1315_v1 = vld [vmem:[#allocation5 + $0x124] sm:$0xf0]  ;;  %v932_v5 = vld [vmem:[#allocation5 + $0x10] sm:$0xf]  ;;  %v1005_v6 = vor.u32 %v1299_v63, %v1004_v61 }
  0x28   :  { %537 = vmatpush.bf16.msra.mxu1 %v1021_v45  ;;  %v1132_v2 = vld [vmem:[#allocation5 + $0x1a0] sm:$0xf]  ;;  %v1331_v3 = vld [vmem:[#allocation5 + $0x1a4] sm:$0xf0]  ;;  %v1069_v7 = vor.u32 %v1315_v1, %v1068_v0  ;;  %v1281_v8 = vld [vmem:[#allocation5 + $0x14] sm:$0xf0] }
  0x29   :  { %551 = vmatpush.bf16.msra.mxu2 %v1085_v46  ;;  %v996_v9 = vld [vmem:[#allocation5 + $0x90] sm:$0xf]  ;;  %v1297_v10 = vld [vmem:[#allocation5 + $0x94] sm:$0xf0]  ;;  %v1133_v11 = vor.u32 %v1331_v3, %v1132_v2  ;;  %v924_v16 = vld [vmem:[#allocation5] sm:$0xf]  ;;  %v933_v18 = vor.u32 %v1281_v8, %v932_v5 }
  0x2a   :  { %565 = vmatpush.bf16.msra.mxu3 %v1149_v50  ;;  %v1060_v12 = vld [vmem:[#allocation5 + $0x110] sm:$0xf]  ;;  %v1313_v13 = vld [vmem:[#allocation5 + $0x114] sm:$0xf0]  ;;  %v1279_v17 = vld [vmem:[#allocation5 + $0x4] sm:$0xf0]  ;;  %v997_v23 = vor.u32 %v1297_v10, %v996_v9 }
  0x2b   :  { %524 = vmatpush.bf16.msra.mxu0 %v949_v56  ;;  %v1124_v14 = vld [vmem:[#allocation5 + $0x190] sm:$0xf]  ;;  %v1329_v15 = vld [vmem:[#allocation5 + $0x194] sm:$0xf0]  ;;  %v988_v19 = vld [vmem:[#allocation5 + $0x80] sm:$0xf]  ;;  %v1061_v24 = vor.u32 %v1313_v13, %v1060_v12  ;;  %v925_v35 = vor.u32 %v1279_v17, %v924_v16 }
  0x2c   :  { %538 = vmatpush.bf16.msra.mxu1 %v1013_v57  ;;  %v1295_v20 = vld [vmem:[#allocation5 + $0x84] sm:$0xf0]  ;;  %v1052_v21 = vld [vmem:[#allocation5 + $0x100] sm:$0xf]  ;;  %v1292_v27 = vld [vmem:[#allocation5 + $0x74] sm:$0xf]  ;;  %v1125_v28 = vor.u32 %v1329_v15, %v1124_v14 }
  0x2d   :  { %552 = vmatpush.bf16.msra.mxu2 %v1077_v58  ;;  %v1311_v22 = vld [vmem:[#allocation5 + $0x104] sm:$0xf0]  ;;  %v1116_v25 = vld [vmem:[#allocation5 + $0x180] sm:$0xf]  ;;  %v982_v29 = vld [vmem:[#allocation5 + $0x78] sm:$0xf0]  ;;  %v989_v39 = vor.u32 %v1295_v20, %v988_v19 }
  0x2e   :  { %566 = vmatpush.bf16.msra.mxu3 %v1141_v62  ;;  %v1327_v26 = vld [vmem:[#allocation5 + $0x184] sm:$0xf0]  ;;  %v1308_v30 = vld [vmem:[#allocation5 + $0xf4] sm:$0xf]  ;;  %v1046_v31 = vld [vmem:[#allocation5 + $0xf8] sm:$0xf0]  ;;  %v1053_v40 = vor.u32 %v1311_v22, %v1052_v21  ;;  %v985_v45 = vor.u32 %v1292_v27, %v982_v29 }
  0x2f   :  { %525 = vmatpush.bf16.msra.mxu0 %v941_v4  ;;  %v1324_v32 = vld [vmem:[#allocation5 + $0x174] sm:$0xf]  ;;  %v1110_v33 = vld [vmem:[#allocation5 + $0x178] sm:$0xf0]  ;;  %v916_v37 = vld [vmem:[#allocation2 + $0x8] sm:$0xf]  ;;  %v1117_v44 = vor.u32 %v1327_v26, %v1116_v25  ;;  %v1049_v49 = vor.u32 %v1308_v30, %v1046_v31 }
  0x30   :  { %539 = vmatpush.bf16.msra.mxu1 %v1005_v6  ;;  %v1340_v34 = vld [vmem:[#allocation5 + $0x1f4] sm:$0xf]  ;;  %v1174_v36 = vld [vmem:[#allocation5 + $0x1f8] sm:$0xf0]  ;;  %v1277_v38 = vld [vmem:[#allocation2 + $0x14] sm:$0xf0]  ;;  %v1113_v50 = vor.u32 %v1324_v32, %v1110_v33 }
  0x31   :  { %553 = vmatpush.bf16.msra.mxu2 %v1069_v7  ;;  %v908_v41 = vld [vmem:[#allocation2] sm:$0xf]  ;;  %v1276_v42 = vld [vmem:[#allocation2 + $0xc] sm:$0xf0]  ;;  %v1275_v43 = vld [vmem:[#allocation2 + $0xc] sm:$0xf]  ;;  %v1177_v54 = vor.u32 %v1340_v34, %v1174_v36  ;;  %v1608_v55 = vor.u32 %v1277_v38, %v916_v37 }
  0x32   :  { %567 = vmatpush.bf16.msra.mxu3 %v1133_v11  ;;  %v918_v46 = vld [vmem:[#allocation2 + $0x18] sm:$0xf0]  ;;  %v1290_v47 = vld [vmem:[#allocation5 + $0x64] sm:$0xf]  ;;  %v974_v48 = vld [vmem:[#allocation5 + $0x68] sm:$0xf0]  ;;  %v1610_v59 = vor.u32 %v1276_v42, %v908_v41 }
  0x33   :  { %526 = vmatpush.bf16.msra.mxu0 %v933_v18  ;;  %v1306_v51 = vld [vmem:[#allocation5 + $0xe4] sm:$0xf]  ;;  %v910_v53 = vld [vmem:[#allocation2 + $0x10] sm:$0xf0]  ;;  %v1038_v56 = vld [vmem:[#allocation5 + $0xe8] sm:$0xf0]  ;;  %v1612_v60 = vor.u32 %v1275_v43, %v918_v46  ;;  %v977_v63 = vor.u32 %v1290_v47, %v974_v48 }
  0x34   :  { %540 = vmatpush.bf16.msra.mxu1 %v997_v23  ;;  %v1274_v52 = vld [vmem:[#allocation2 + $0x4] sm:$0xf]  ;;  %v1102_v58 = vld [vmem:[#allocation5 + $0x168] sm:$0xf0]  ;;  %v1041_v1 = vor.u32 %v1306_v51, %v1038_v56  ;;  %v1288_v3 = vld [vmem:[#allocation5 + $0x54] sm:$0xf] }
  0x35   :  { %554 = vmatpush.bf16.msra.mxu2 %v1061_v24  ;;  %v1322_v57 = vld [vmem:[#allocation5 + $0x164] sm:$0xf]  ;;  %v1166_v62 = vld [vmem:[#allocation5 + $0x1e8] sm:$0xf0]  ;;  %v1614_v0 = vor.u32 %v1274_v52, %v910_v53  ;;  %v966_v4 = vld [vmem:[#allocation5 + $0x58] sm:$0xf0] }
  0x36   :  { %568 = vmatpush.bf16.msra.mxu3 %v1125_v28  ;;  %v1338_v61 = vld [vmem:[#allocation5 + $0x1e4] sm:$0xf]  ;;  %v1105_v2 = vor.u32 %v1322_v57, %v1102_v58  ;;  %v1304_v5 = vld [vmem:[#allocation5 + $0xd4] sm:$0xf]  ;;  %v1030_v7 = vld [vmem:[#allocation5 + $0xd8] sm:$0xf0]  ;;  %v969_v12 = vor.u32 %v1288_v3, %v966_v4 }
  0x37   :  { %527 = vmatpush.bf16.msra.mxu0 %v925_v35  ;;  %v1169_v6 = vor.u32 %v1338_v61, %v1166_v62  ;;  %v1320_v8 = vld [vmem:[#allocation5 + $0x154] sm:$0xf]  ;;  %v1094_v9 = vld [vmem:[#allocation5 + $0x158] sm:$0xf0]  ;;  %v1033_v13 = vor.u32 %v1304_v5, %v1030_v7  ;;  %v1286_v15 = vld [vmem:[#allocation5 + $0x44] sm:$0xf] }
  0x38   :  { %541 = vmatpush.bf16.msra.mxu1 %v989_v39  ;;  %v1336_v10 = vld [vmem:[#allocation5 + $0x1d4] sm:$0xf]  ;;  %v1158_v11 = vld [vmem:[#allocation5 + $0x1d8] sm:$0xf0]  ;;  %v1097_v14 = vor.u32 %v1320_v8, %v1094_v9  ;;  %v958_v16 = vld [vmem:[#allocation5 + $0x48] sm:$0xf0] }
  0x39   :  { %555 = vmatpush.bf16.msra.mxu2 %v1053_v40  ;;  %v1302_v17 = vld [vmem:[#allocation5 + $0xc4] sm:$0xf]  ;;  %v1161_v18 = vor.u32 %v1336_v10, %v1158_v11  ;;  %v1022_v19 = vld [vmem:[#allocation5 + $0xc8] sm:$0xf0]  ;;  %v961_v24 = vor.u32 %v1286_v15, %v958_v16  ;;  %v1284_v27 = vld [vmem:[#allocation5 + $0x34] sm:$0xf] }
  0x3a   :  { %569 = vmatpush.bf16.msra.mxu3 %v1117_v44  ;;  %528 = vmatmul.bf16.vlgmr.msra.gmra.mxu0 %v1610_v59  ;;  %v1318_v20 = vld [vmem:[#allocation5 + $0x144] sm:$0xf]  ;;  %v1086_v21 = vld [vmem:[#allocation5 + $0x148] sm:$0xf0]  ;;  %v1025_v25 = vor.u32 %v1302_v17, %v1022_v19  ;;  %v950_v28 = vld [vmem:[#allocation5 + $0x38] sm:$0xf0] }
  0x3b   :  { %576 = vmatpush.bf16.msrb.mxu0 %v985_v45  ;;  %542 = vmatmul.bf16.vlgmr.msra.gmra.mxu1 %v1614_v0  ;;  %v1334_v22 = vld [vmem:[#allocation5 + $0x1c4] sm:$0xf]  ;;  %v1150_v23 = vld [vmem:[#allocation5 + $0x1c8] sm:$0xf0]  ;;  %v1089_v26 = vor.u32 %v1318_v20, %v1086_v21  ;;  %v1300_v29 = vld [vmem:[#allocation5 + $0xb4] sm:$0xf]  ;;  %v953_v36 = vor.u32 %v1284_v27, %v950_v28 }
  0x3c   :  { %590 = vmatpush.bf16.msrb.mxu1 %v1049_v49  ;;  %556 = vmatmul.bf16.vlgmr.msra.gmra.mxu2 %v1608_v55  ;;  %v1153_v30 = vor.u32 %v1334_v22, %v1150_v23  ;;  %v1014_v31 = vld [vmem:[#allocation5 + $0xb8] sm:$0xf0]  ;;  %v1316_v32 = vld [vmem:[#allocation5 + $0x134] sm:$0xf]  ;;  %v1282_v39 = vld [vmem:[#allocation5 + $0x24] sm:$0xf] }
  0x3d   :  { %604 = vmatpush.bf16.msrb.mxu2 %v1113_v50  ;;  %570 = vmatmul.bf16.vlgmr.msra.gmra.mxu3 %v1612_v60  ;;  %v1078_v33 = vld [vmem:[#allocation5 + $0x138] sm:$0xf0]  ;;  %v1332_v34 = vld [vmem:[#allocation5 + $0x1b4] sm:$0xf]  ;;  %v1017_v37 = vor.u32 %v1300_v29, %v1014_v31  ;;  %v942_v40 = vld [vmem:[#allocation5 + $0x28] sm:$0xf0] }
  0x3e   :  { %618 = vmatpush.bf16.msrb.mxu3 %v1177_v54  ;;  %v1142_v35 = vld [vmem:[#allocation5 + $0x1b8] sm:$0xf0]  ;;  %v1081_v38 = vor.u32 %v1316_v32, %v1078_v33  ;;  %v1298_v41 = vld [vmem:[#allocation5 + $0xa4] sm:$0xf]  ;;  %v1006_v43 = vld [vmem:[#allocation5 + $0xa8] sm:$0xf0]  ;;  %v945_v48 = vor.u32 %v1282_v39, %v942_v40 }
  0x3f   :  { %577 = vmatpush.bf16.msrb.mxu0 %v977_v63  ;;  %v1145_v42 = vor.u32 %v1332_v34, %v1142_v35  ;;  %v1314_v44 = vld [vmem:[#allocation5 + $0x124] sm:$0xf]  ;;  %v1070_v45 = vld [vmem:[#allocation5 + $0x128] sm:$0xf0]  ;;  %v1009_v49 = vor.u32 %v1298_v41, %v1006_v43  ;;  %v1280_v51 = vld [vmem:[#allocation5 + $0x14] sm:$0xf] }
  0x40   :  { %591 = vmatpush.bf16.msrb.mxu1 %v1041_v1  ;;  %v1330_v46 = vld [vmem:[#allocation5 + $0x1a4] sm:$0xf]  ;;  %v1134_v47 = vld [vmem:[#allocation5 + $0x1a8] sm:$0xf0]  ;;  %v1073_v50 = vor.u32 %v1314_v44, %v1070_v45  ;;  %v934_v52 = vld [vmem:[#allocation5 + $0x18] sm:$0xf0] }
  0x41   :  { %605 = vmatpush.bf16.msrb.mxu2 %v1105_v2  ;;  %v1296_v53 = vld [vmem:[#allocation5 + $0x94] sm:$0xf]  ;;  %v1137_v54 = vor.u32 %v1330_v46, %v1134_v47  ;;  %v998_v56 = vld [vmem:[#allocation5 + $0x98] sm:$0xf0]  ;;  %v937_v63 = vor.u32 %v1280_v51, %v934_v52  ;;  %v1278_v3 = vld [vmem:[#allocation5 + $0x4] sm:$0xf] }
  0x42   :  { %619 = vmatpush.bf16.msrb.mxu3 %v1169_v6  ;;  %v1312_v57 = vld [vmem:[#allocation5 + $0x114] sm:$0xf]  ;;  %v1062_v58 = vld [vmem:[#allocation5 + $0x118] sm:$0xf0]  ;;  %v1001_v1 = vor.u32 %v1296_v53, %v998_v56  ;;  %v926_v4 = vld [vmem:[#allocation5 + $0x8] sm:$0xf0] }
  0x43   :  { %578 = vmatpush.bf16.msrb.mxu0 %v969_v12  ;;  %v1328_v61 = vld [vmem:[#allocation5 + $0x194] sm:$0xf]  ;;  %v1126_v62 = vld [vmem:[#allocation5 + $0x198] sm:$0xf0]  ;;  %v1065_v2 = vor.u32 %v1312_v57, %v1062_v58  ;;  %v1294_v5 = vld [vmem:[#allocation5 + $0x84] sm:$0xf]  ;;  %v929_v12 = vor.u32 %v1278_v3, %v926_v4 }
  0x44   :  { %592 = vmatpush.bf16.msrb.mxu1 %v1033_v13  ;;  %v1129_v6 = vor.u32 %v1328_v61, %v1126_v62  ;;  %v990_v7 = vld [vmem:[#allocation5 + $0x88] sm:$0xf0]  ;;  %v1310_v8 = vld [vmem:[#allocation5 + $0x104] sm:$0xf]  ;;  %v1349_v16 = vld [vmem:[#allocation8 + $0x38] sm:$0xff]  ;;  %s891_s11 = sshll.u32 %s1643_s7, 4  ;;  %s892_s11 = int_to_ptr.hbm [resolvable:$true] %s891_s11 }
  0x45   :  { %606 = vmatpush.bf16.msrb.mxu2 %v1097_v14  ;;  %v1054_v9 = vld [vmem:[#allocation5 + $0x108] sm:$0xf0]  ;;  %v1326_v10 = vld [vmem:[#allocation5 + $0x184] sm:$0xf]  ;;  %v993_v13 = vor.u32 %v1294_v5, %v990_v7  ;;  %v1348_v17 = vld [vmem:[#allocation8 + $0x30] sm:$0xff] }
  0x46   :  { %620 = vmatpush.bf16.msrb.mxu3 %v1161_v18  ;;  %v1118_v11 = vld [vmem:[#allocation5 + $0x188] sm:$0xf0]  ;;  %v1057_v14 = vor.u32 %v1310_v8, %v1054_v9  ;;  %v1346_v19 = vld [vmem:[#allocation8 + $0x20] sm:$0xff]  ;;  %v1345_v20 = vld [vmem:[#allocation8 + $0x18] sm:$0xff] }
  0x47   :  { %579 = vmatpush.bf16.msrb.mxu0 %v961_v24  ;;  %v1121_v15 = vor.u32 %v1326_v10, %v1118_v11  ;;  %v1347_v18 = vld [vmem:[#allocation8 + $0x28] sm:$0xff]  ;;  %v1344_v21 = vld [vmem:[#allocation8 + $0x10] sm:$0xff]  ;;  %v171_v23 = vld [vmem:[#allocation7] sm:$0x3] }
  0x48   :  { %593 = vmatpush.bf16.msrb.mxu1 %v1025_v25  ;;  %v1343_v22 = vld [vmem:[#allocation8 + $0x8] sm:$0xff]  ;;  %v1342_v24 = vld [vmem:[#allocation8] sm:$0xff]  ;;  %v172_v25 = vunpack.c.l.bf16 %v171_v23  ;;  %v1353_v32 = vld [vmem:[#allocation8 + $0x58] sm:$0xff] }
  0x49   :  { %607 = vmatpush.bf16.msrb.mxu2 %v1089_v26  ;;  %v1354_v27 = vld [vmem:[#allocation8 + $0x60] sm:$0xff] }
  0x4a   :  { %621 = vmatpush.bf16.msrb.mxu3 %v1153_v30  ;;  %v175_v51 = vperm.slane %v172_v25, 2 }
  0x4b   :  { %580 = vmatpush.bf16.msrb.mxu0 %v953_v36 }
  0x4c   :  { %594 = vmatpush.bf16.msrb.mxu1 %v1017_v37  ;;  %v1352_v37 = vld [vmem:[#allocation8 + $0x50] sm:$0xff]  ;;  %v179_v52 = vperm.slane %v175_v51, 0 }
  0x4d   :  { %608 = vmatpush.bf16.msrb.mxu2 %v1081_v38 }
  0x4e   :  { %622 = vmatpush.bf16.msrb.mxu3 %v1145_v42  ;;  %v1351_v42 = vld [vmem:[#allocation8 + $0x48] sm:$0xff] }
  0x4f   :  { %581 = vmatpush.bf16.msrb.mxu0 %v945_v48  ;;  %v1350_v48 = vld [vmem:[#allocation8 + $0x40] sm:$0xff] }
  0x50   :  { %595 = vmatpush.bf16.msrb.mxu1 %v1009_v49 }
  0x51   :  { %609 = vmatpush.bf16.msrb.mxu2 %v1073_v50 }
  0x52   :  { %623 = vmatpush.bf16.msrb.mxu3 %v1137_v54 }
  0x53   :  { %582 = vmatpush.bf16.msrb.mxu0 %v937_v63 }
  0x54   :  { %596 = vmatpush.bf16.msrb.mxu1 %v1001_v1 }
  0x55   :  { %610 = vmatpush.bf16.msrb.mxu2 %v1065_v2 }
  0x56   :  { %624 = vmatpush.bf16.msrb.mxu3 %v1129_v6 }
  0x57   :  { %583 = vmatpush.bf16.msrb.mxu0 %v929_v12  ;;  %v1365_v12 = vld [vmem:[#allocation10 + $0x38] sm:$0xff] }
  0x58   :  { %597 = vmatpush.bf16.msrb.mxu1 %v993_v13  ;;  %v1364_v13 = vld [vmem:[#allocation10 + $0x30] sm:$0xff] }
  0x59   :  { %611 = vmatpush.bf16.msrb.mxu2 %v1057_v14  ;;  %v1363_v14 = vld [vmem:[#allocation10 + $0x28] sm:$0xff] }
  0x5a   :  { %625 = vmatpush.bf16.msrb.mxu3 %v1121_v15  ;;  %584 = vmatmul.bf16.vlgmr.msrb.gmra.mxu0 %v1610_v59  ;;  %v1357_v59 = vld [vmem:[#allocation8 + $0x78] sm:$0xff]  ;;  %v1362_v15 = vld [vmem:[#allocation10 + $0x20] sm:$0xff] }
  0x5b   :  { %769 = vmatpush.bf16.msra.mxu0 %v1349_v16  ;;  %598 = vmatmul.bf16.vlgmr.msrb.gmra.mxu1 %v1614_v0  ;;  %v174_v0 = vperm.slane %v172_v25, 0  ;;  %v1361_v16 = vld [vmem:[#allocation10 + $0x18] sm:$0xff] }
  0x5c   :  { %612 = vmatmul.bf16.vlgmr.msrb.gmra.mxu2 %v1608_v55  ;;  %783 = vmatpush.bf16.msra.mxu1 %v1357_v59  ;;  %v1356_v55 = vld [vmem:[#allocation8 + $0x70] sm:$0xff] }
  0x5d   :  { %626 = vmatmul.bf16.vlgmr.msrb.gmra.mxu3 %v1612_v60  ;;  %v1355_v60 = vld [vmem:[#allocation8 + $0x68] sm:$0xff]  ;;  %v178_v26 = vperm.slane %v174_v0, 0  ;;  %867 = vmatpush.bf16.msra.mxu2 %v1365_v12 }
  0x5f   :  { %770 = vmatpush.bf16.msra.mxu0 %v1348_v17  ;;  %v1360_v17 = vld [vmem:[#allocation10 + $0x10] sm:$0xff] }
  0x60   :  { %784 = vmatpush.bf16.msra.mxu1 %v1356_v55 }
  0x61   :  { %868 = vmatpush.bf16.msra.mxu2 %v1364_v13 }
  0x63   :  { %771 = vmatpush.bf16.msra.mxu0 %v1347_v18  ;;  %v1359_v18 = vld [vmem:[#allocation10 + $0x8] sm:$0xff] }
  0x64   :  { %785 = vmatpush.bf16.msra.mxu1 %v1355_v60 }
  0x65   :  { %869 = vmatpush.bf16.msra.mxu2 %v1363_v14 }
  0x67   :  { %772 = vmatpush.bf16.msra.mxu0 %v1346_v19  ;;  %v1358_v19 = vld [vmem:[#allocation10] sm:$0xff] }
  0x68   :  { %786 = vmatpush.bf16.msra.mxu1 %v1354_v27 }
  0x69   :  { %870 = vmatpush.bf16.msra.mxu2 %v1362_v15 }
  0x6b   :  { %773 = vmatpush.bf16.msra.mxu0 %v1345_v20  ;;  %v670_v20 = vld [vmem:[%s1640_s4] sm:$0x1]  ;;  %s1546_s4 = smov [#allocation11]  }
  0x6c   :  { %787 = vmatpush.bf16.msra.mxu1 %v1353_v32  ;;  %s889_s8 = sshll.u32 %s1546_s4, 4  ;;  %s890_s8 = int_to_ptr.vmem [resolvable:$true] %s889_s8 }
  0x6d   :  { %871 = vmatpush.bf16.msra.mxu2 %v1361_v16 }
  0x6f   :  { %774 = vmatpush.bf16.msra.mxu0 %v1344_v21 }
  0x70   :  { %788 = vmatpush.bf16.msra.mxu1 %v1352_v37 }
  0x71   :  { %872 = vmatpush.bf16.msra.mxu2 %v1360_v17 }
  0x73   :  { %775 = vmatpush.bf16.msra.mxu0 %v1343_v22  ;;  %v671_v22 = vunpack.c.l.bf16 %v670_v20 }
  0x74   :  { %789 = vmatpush.bf16.msra.mxu1 %v1351_v42 }
  0x75   :  { %873 = vmatpush.bf16.msra.mxu2 %v1359_v18 }
  0x77   :  { %776 = vmatpush.bf16.msra.mxu0 %v1342_v24  ;;  %v672_v24 = vperm.slane %v671_v22, 0 }
  0x78   :  { %790 = vmatpush.bf16.msra.mxu1 %v1350_v48 }
  0x79   :  { %874 = vmatpush.bf16.msra.mxu2 %v1358_v19 }
  0xb7   :  { %v529_v28 = vpop.f32.mrf.mxu0 }
  0xb8   :  { %v530_v29 = vadd.f32 %v529_v28, %v178_v26  ;;  %v543_v30 = vpop.f32.mrf.mxu1 }
  0xba   :  { %v544_v31 = vadd.f32 %v543_v30, %v530_v29  ;;  %v816_v30 = vld [vmem:[%s1642_s6] sm:$0x1] }
  0xbb   :  { %v817_v32 = vunpack.c.l.bf16 %v816_v30 }
  0xbf   :  { %v557_v33 = vpop.f32.mrf.mxu2  ;;  %v531_v36 = vpop.f32.mrf.mxu0 }
  0xc0   :  { %v571_v34 = vpop.f32.mrf.mxu3  ;;  %v558_v35 = vadd.f32 %v557_v33, %v544_v31  ;;  %v532_v38 = vadd.f32 %v531_v36, %v178_v26  ;;  %v545_v39 = vpop.f32.mrf.mxu1  ;;  %v818_v33 = vperm.slane %v817_v32, 0 }
  0xc2   :  { %v546_v40 = vadd.f32 %v545_v39, %v532_v38  ;;  %v572_v41 = vadd.f32 %v571_v34, %v558_v35 }
  0xc4   :  { %v632_v46 = vmax.f32 %v572_v41, 0.0 }
  0xc7   :  { %v559_v43 = vpop.f32.mrf.mxu2 }
  0xc8   :  { %v560_v44 = vadd.f32 %v559_v43, %v546_v40  ;;  %v573_v45 = vpop.f32.mrf.mxu3 }
  0xca   :  { %v574_v47 = vadd.f32 %v573_v45, %v560_v44 }
  0xcc   :  { %v634_v49 = vmax.f32 %v574_v47, 0.0 }
  0xce   :  { %v636_v50 = vpack.c.bf16 %v634_v49, %v632_v46 }
  0xd0   :  { %777 = vmatmul.bf16.vlgmr.msra.gmra.mxu0 %v636_v50 }
  0xd7   :  { %v585_v53 = vpop.f32.mrf.mxu0 }
  0xd8   :  { %v599_v54 = vpop.f32.mrf.mxu1  ;;  %v586_v56 = vadd.f32 %v585_v53, %v179_v52 }
  0xda   :  { %v600_v58 = vadd.f32 %v599_v54, %v586_v56 }
  0xdf   :  { %v613_v57 = vpop.f32.mrf.mxu2  ;;  %v587_v62 = vpop.f32.mrf.mxu0 }
  0xe0   :  { %v627_v61 = vpop.f32.mrf.mxu3  ;;  %v588_v63 = vadd.f32 %v587_v62, %v179_v52  ;;  %v614_v1 = vadd.f32 %v613_v57, %v600_v58  ;;  %v601_v2 = vpop.f32.mrf.mxu1 }
  0xe2   :  { %v602_v3 = vadd.f32 %v601_v2, %v588_v63  ;;  %v628_v5 = vadd.f32 %v627_v61, %v614_v1 }
  0xe4   :  { %v633_v9 = vmax.f32 %v628_v5, 0.0 }
  0xe7   :  { %v615_v4 = vpop.f32.mrf.mxu2 }
  0xe8   :  { %v616_v6 = vadd.f32 %v615_v4, %v602_v3  ;;  %v629_v7 = vpop.f32.mrf.mxu3 }
  0xea   :  { %v630_v8 = vadd.f32 %v629_v7, %v616_v6 }
  0xec   :  { %v635_v10 = vmax.f32 %v630_v8, 0.0 }
  0xee   :  { %v637_v11 = vpack.c.bf16 %v635_v10, %v633_v9 }
  0xf0   :  { %791 = vmatmul.bf16.vlgmr.msra.gmra.mxu1 %v637_v11 }
 0x14d   :  { %v778_v21 = vpop.f32.mrf.mxu0 }
 0x14e   :  { %v779_v25 = vadd.f32 %v778_v21, %v672_v24 }
 0x155   :  { %v780_v59 = vpop.f32.mrf.mxu0 }
 0x156   :  { %v781_v55 = vadd.f32 %v780_v59, %v672_v24 }
 0x16d   :  { %v792_v23 = vpop.f32.mrf.mxu1 }
 0x16e   :  { %v793_v0 = vadd.f32 %v792_v23, %v779_v25 }
 0x170   :  { %v797_v27 = vmax.f32 %v793_v0, 0.0 }
 0x175   :  { %v794_v60 = vpop.f32.mrf.mxu1 }
 0x176   :  { %v795_v26 = vadd.f32 %v794_v60, %v781_v55 }
 0x178   :  { %v798_v28 = vmax.f32 %v795_v26, 0.0 }
 0x17a   :  { %v799_v29 = vpack.c.bf16 %v798_v28, %v797_v27 }
 0x17c   :  { %875 = vmatmul.bf16.vlgmr.msra.gmra.mxu2 %v799_v29 }
 0x1ff   :  { %v876_v31 = vpop.f32.mrf.mxu2 }
 0x200   :  { %v877_v35 = vadd.f32 %v876_v31, %v818_v33 }
 0x207   :  { %v878_v34 = vpop.f32.mrf.mxu2 }
 0x208   :  { %v879_v36 = vadd.f32 %v878_v34, %v818_v33 }
 0x20a   :  { %v1369_v37 = vpack.c.bf16 %v879_v36, %v877_v35 }
 0x20c   :  { %1370 = vst [vmem:[#allocation11] sm:$0xff] %v1369_v37  }
 0x20d   :  { %897 = dma.vmem_to_hbm [thread:$0]  %s890_s8, 128, %s892_s11, [#allocation4], %s1539_s13, %s1539_s13, %s1540_s14  }
 0x20e   :  { %1533 = dma.done.wait [#allocation4], 128  }
 0x20f   :  { %1534 = vsyncadd [#allocation4], 4294967168 }
 0x210   :  { %902 = vsyncpa [#allocation3], 1 }
 0x211   :  { %903 = vsyncpa [#allocation6], 1 }
 0x212   :  { %904 = vsyncpa [#allocation9], 1 }
 0x213   :  { %905 = vsyncpa [#allocation4], 1 }

</bundles_post_ra>
